<compile_context>
chip_gen: v7x
topology: tpu7x:2x2x1
jax: 0.10.0
libtpu: 0.0.40
codegen_flags: <defaults>
</compile_context>

<pallas_src>
import jax
import jax.numpy as jnp
import numpy as np
from jax.experimental import pallas as pl
from jax.experimental.pallas import tpu as pltpu


# ----------------------------------------------------------------------------
# Helpers
# ----------------------------------------------------------------------------
def _rup(n, m):
    return ((n + m - 1) // m) * m


def _pad(n):
    # Lane padding policy (perf review): full 128-lane alignment only for dims
    # that are already >= 128; small dims pad to the 8-sublane grain so tiny
    # problems don't burn 8-32x zero FLOPs / bytes.
    return _rup(n, 128) if n >= 128 else _rup(n, 8)


def _pad2(a, rows, cols):
    a = np.asarray(a, np.float32)
    if a.ndim == 1:
        a = a.reshape(1, -1)
    out = np.zeros((rows, cols), np.float32)
    out[: a.shape[0], : a.shape[1]] = a
    return out


def _vmem_capacity_bytes():
    # Generation-aware budget (v5e/v6e: 128 MiB per TC, v7x: 64 MiB per TC).
    try:
        info = pltpu.get_tpu_info()
        cap = int(getattr(info, "vmem_capacity_bytes", 0) or 0)
        if cap > 0:
            return cap
    except Exception:
        pass
    return 64 * 1024 * 1024


def _pick_batch_tile(B, requested=256):
    b8 = _rup(B, 8)
    if b8 <= 8:
        return 8
    tb = min(_rup(requested, 8), b8)
    # v7x shards the 'parallel' batch axis across its 2 TensorCores: make sure
    # there are >= 2 batch tiles whenever the batch is big enough to split.
    if b8 // tb < 2:
        tb = _rup((B + 1) // 2, 8)
    return tb


def split_mask(dim_feature):
    # TODO(synk): split_mask is not defined in the reference source; assume the
    # standard half-split binary mask (first half 1, second half 0).
    m = np.zeros((dim_feature,), np.float32)
    m[: dim_feature // 2] = 1.0
    return m


# ----------------------------------------------------------------------------
# Fused Pallas kernel: the WHOLE conditional flow (all 2*n_layers couplings)
# grid = (batch_tiles, n_steps); batch axis "parallel", step axis "arbitrary".
# y_ref is the VMEM-resident flow state across the step axis; ld_acc (scratch)
# holds the per-lane log-det and is reduced to (TB, 1) on the last step.
# ----------------------------------------------------------------------------
def _make_kernel(n_steps, Dp, Cp, Hp, fuse, resident):
    def kernel(x_ref, c_ref, mask_ref, b1_ref, b2_ref, b3s_ref, b3t_ref, *rest):
        if fuse:
            (w1_ref, w2_ref, w3_ref,
             y_ref, ld_ref, ld_acc_ref, xc_ref) = rest
        else:
            (w1x_ref, w1c_ref, w2_ref, w3s_ref, w3t_ref,
             y_ref, ld_ref, ld_acc_ref) = rest

        s = pl.program_id(1)
        ws = s if resident else 0          # resident: step-index the stacked weights
        f32 = jnp.float32

        @pl.when(s == 0)
        def _init():
            y_ref[...] = x_ref[...]        # load the input once per batch tile
            ld_acc_ref[...] = jnp.zeros(ld_acc_ref.shape, f32)
            if fuse:
                # condition half of the fused [x | c] operand: written once per
                # batch tile (Dp is 128-aligned here => lane-dense store).
                xc_ref[:, Dp:] = c_ref[...]

        x = y_ref[...]                     # (TB, Dp) current state (VMEM)
        mask = mask_ref[ws]                # (1, Dp); padded feature lanes == 1
        keep = mask > 0.0
        b1, b2 = b1_ref[ws], b2_ref[ws]    # (1, Hp)
        b3s, b3t = b3s_ref[ws], b3t_ref[ws]  # (1, Dp)

        # network(concat([mask*x, condition])); the mask is folded into W1x rows.
        if fuse:
            xc_ref[:, :Dp] = x
            h = jnp.dot(xc_ref[...], w1_ref[ws].astype(f32),
                        preferred_element_type=f32) + b1
        else:
            h = (jnp.dot(x, w1x_ref[ws].astype(f32), preferred_element_type=f32)
                 + jnp.dot(c_ref[...], w1c_ref[ws].astype(f32),
                           preferred_element_type=f32) + b1)
        h = jnp.where(h >= 0.0, h, 0.01 * h)           # LeakyReLU(0.01)
        h = jnp.dot(h, w2_ref[ws].astype(f32), preferred_element_type=f32) + b2
        h = jnp.where(h >= 0.0, h, 0.01 * h)

        if fuse:
            st = jnp.dot(h, w3_ref[ws].astype(f32), preferred_element_type=f32)
            scale = jnp.tanh(st[:, :Dp] + b3s)         # 128-aligned column split
            translate = st[:, Dp:] + b3t
        else:
            scale = jnp.tanh(
                jnp.dot(h, w3s_ref[ws].astype(f32), preferred_element_type=f32) + b3s)
            translate = (
                jnp.dot(h, w3t_ref[ws].astype(f32), preferred_element_type=f32) + b3t)

        # y = mask*x + (1-mask)*(x*exp(scale) + translate)   (mask is binary)
        y_ref[...] = jnp.where(keep, x, x * jnp.exp(scale) + translate)
        ld_acc_ref[...] = ld_acc_ref[...] + jnp.where(keep, 0.0, scale)

        @pl.when(s == n_steps - 1)
        def _finalize():
            # cross-lane reduce on the otherwise-idle XLU; (TB, 1) output store.
            ld_ref[...] = jnp.sum(ld_acc_ref[...], axis=-1, keepdims=True)

    return kernel


def flow_forward(x, condition, packed, final_perm, *, batch_tile=256):
    """Full ConditionalFlow.forward(x, condition) in ONE pallas_call."""
    B, D = x.shape
    C = condition.shape[1]
    fuse = "w1" in packed

    S, _, Dp = packed["mask"].shape
    Hp = packed["w2"].shape[-1]
    Cp = (packed["w1"].shape[1] - Dp) if fuse else packed["w1c"].shape[1]

    TB = _pick_batch_tile(B, batch_tile)
    Bp = _rup(B, TB)
    n_bt = Bp // TB

    xp = jnp.zeros((Bp, Dp), jnp.float32).at[:B, :D].set(x)
    cp = jnp.zeros((Bp, Cp), jnp.float32).at[:B, :C].set(condition)

    aux_ops = [packed["mask"], packed["b1"], packed["b2"], packed["b3s"], packed["b3t"]]
    w_ops = ([packed["w1"], packed["w2"], packed["w3"]] if fuse else
             [packed["w1x"], packed["w1c"], packed["w2"], packed["w3s"], packed["w3t"]])

    # ---- generation-aware VMEM plan: resident weights vs. per-step streaming
    w_bytes = sum(int(np.prod(a.shape)) * a.dtype.itemsize for a in w_ops)
    aux_bytes = sum(int(np.prod(a.shape)) * a.dtype.itemsize for a in aux_ops)
    act_bytes = 4 * TB * (Dp + Cp) * 2 + 4 * TB * (Dp + 1) * 2   # x/c in + y/ld out, 2-buffered
    scr_bytes = 4 * TB * Dp + (4 * TB * (Dp + Cp) if fuse else 0)
    vmem_cap = _vmem_capacity_bytes()
    resident_plan = 2 * (w_bytes + aux_bytes) + act_bytes + scr_bytes + (2 << 20)
    resident = resident_plan <= int(0.75 * vmem_cap)
    stream_plan = 3 * ((w_bytes + aux_bytes) // max(S, 1)) + act_bytes + scr_bytes + (2 << 20)
    plan = resident_plan if resident else stream_plan
    vmem_limit = int(max(32 << 20, min(vmem_cap - (16 << 20), plan + (8 << 20))))
    vmem_limit = int(min(vmem_limit, vmem_cap))

    # ---- BlockSpecs
    bmap = lambda b, s: (b, 0)

    def wspec(arr, buffered=False):
        if resident:
            # constant block index + full-array block => DMA'd once, kept in VMEM
            return pl.BlockSpec(tuple(arr.shape), lambda b, s: (0, 0, 0))
        blk = (1,) + tuple(arr.shape[1:])
        if buffered:
            # v5e: triple-buffer the big streamed weight matrices to hide DMA.
            return pl.BlockSpec(blk, lambda b, s: (s, 0, 0),
                                pipeline_mode=pl.Buffered(3))
        return pl.BlockSpec(blk, lambda b, s: (s, 0, 0))

    in_specs = ([pl.BlockSpec((TB, Dp), bmap), pl.BlockSpec((TB, Cp), bmap)]
                + [wspec(a) for a in aux_ops]
                + [wspec(a, buffered=True) for a in w_ops])
    out_specs = (pl.BlockSpec((TB, Dp), bmap),     # y: flow state, resident over steps
                 pl.BlockSpec((TB, 1), bmap))      # log-det: written on last step
    scratch = [pltpu.VMEM((TB, Dp), jnp.float32)]  # per-lane log-det accumulator
    if fuse:
        scratch.append(pltpu.VMEM((TB, Dp + Cp), jnp.float32))  # fused [x | c] operand

    flops = 2 * Bp * S * ((Dp + Cp) * Hp + Hp * Hp + 2 * Hp * Dp)
    cost = pl.CostEstimate(
        flops=int(flops),
        transcendentals=int(2 * Bp * S * Dp),       # tanh + exp
        bytes_accessed=int(4 * Bp * (2 * Dp + Cp + 1)
                           + (w_bytes + aux_bytes) * (1 if resident else n_bt)))

    kernel = _make_kernel(S, Dp, Cp, Hp, fuse, resident)

    y_full, ld_full = pl.pallas_call(
        kernel,
        out_shape=(jax.ShapeDtypeStruct((Bp, Dp), jnp.float32),
                   jax.ShapeDtypeStruct((Bp, 1), jnp.float32)),
        grid_spec=pltpu.PrefetchScalarGridSpec(
            num_scalar_prefetch=0,
            grid=(n_bt, S),
            in_specs=in_specs,
            out_specs=out_specs,
            scratch_shapes=scratch),
        compiler_params=pltpu.CompilerParams(
            dimension_semantics=("parallel", "arbitrary"),
            vmem_limit_bytes=vmem_limit),
        cost_estimate=cost,
    )(xp, cp, *aux_ops, *w_ops)

    # One composed permutation gather at the very end (all per-block
    # permutations were folded into the packed weights at init time).
    y = y_full[:B, :D][:, final_perm]
    log_det = ld_full[:B, :]
    return y, log_det


# ----------------------------------------------------------------------------
# Parameter construction + permutation/mask folding + padding + bf16 packing
# ----------------------------------------------------------------------------
def _q_bf16(a):
    # Kernel stores weights in bf16 (perf review); quantize once at init so the
    # f32 reference and the kernel see identical weight values (compute is f32).
    return np.asarray(jnp.asarray(np.asarray(a, np.float32), jnp.bfloat16)
                      .astype(jnp.float32))


def _init_linear(key, fan_in, fan_out):
    kw, kb = jax.random.split(key)
    bound = 1.0 / np.sqrt(fan_in)
    w = np.asarray(jax.random.uniform(kw, (fan_in, fan_out), jnp.float32, -bound, bound))
    b = np.asarray(jax.random.uniform(kb, (fan_out,), jnp.float32, -bound, bound))
    return w, b


def _init_coupling(key, D, C, H):
    k1, k2, k3 = jax.random.split(key, 3)
    w1, b1 = _init_linear(k1, D + C, H)
    w2, b2 = _init_linear(k2, H, H)
    w3, b3 = _init_linear(k3, H, 2 * D)
    w1, w2, w3 = _q_bf16(w1), _q_bf16(w2), _q_bf16(w3)
    return dict(w1x=w1[:D], w1c=w1[D:], b1=b1, w2=w2, b2=b2,
                w3s=w3[:, :D], b3s=b3[:D], w3t=w3[:, D:], b3t=b3[D:])


def build_flow(key, D, C, n_layers, H=64):
    """Returns (reference layer list, packed/folded/padded params, final perm)."""
    mask = split_mask(D)
    Dp, Cp, Hp = _pad(D), _pad(C), _pad(H)
    # Fuse [x|c]@[W1x;W1c] (K = Dp+Cp) and the scale|translate heads (N = 2*Dp)
    # into 256-wide GEMMs only when the concat/split boundaries are 128-aligned.
    fuse = (Dp % 128 == 0) and (Cp % 128 == 0)

    names = ("mask", "w1x", "w1c", "b1", "w2", "b2", "w3s", "b3s", "w3t", "b3t")
    eff = {n: [] for n in names}
    ref_layers = []
    G = np.arange(D)                   # composed perm: x_ref[:, j] = x_kernel[:, G[j]]

    for _ in range(n_layers):
        k1, k2, kp, key = jax.random.split(key, 4)
        p1 = _init_coupling(k1, D, C, H)
        p2 = _init_coupling(k2, D, C, H)
        perm = np.asarray(jax.random.permutation(kp, D))

        ref_layers.append(dict(
            mask=jnp.asarray(mask), perm=jnp.asarray(perm),
            p1={k: jnp.asarray(v) for k, v in p1.items()},
            p2={k: jnp.asarray(v) for k, v in p2.items()}))

        # Coupling layers are permutation-equivariant: permute the mask, the
        # x-rows of W1 and the output columns/entries of W3/b3 by the inverse of
        # the permutation composed so far, so the kernel runs entirely in the
        # un-permuted frame.  The binary mask is also folded into W1x rows.
        Ginv = np.argsort(G)
        for m_k, p in ((mask, p1), (1.0 - mask, p2)):
            m_eff = m_k[Ginv]
            eff["mask"].append(m_eff)
            eff["w1x"].append(m_eff[:, None] * p["w1x"][Ginv, :])
            eff["w1c"].append(p["w1c"])
            eff["b1"].append(p["b1"])
            eff["w2"].append(p["w2"])
            eff["b2"].append(p["b2"])
            eff["w3s"].append(p["w3s"][:, Ginv])
            eff["b3s"].append(p["b3s"][Ginv])
            eff["w3t"].append(p["w3t"][:, Ginv])
            eff["b3t"].append(p["b3t"][Ginv])
        G = G[perm]                    # compose this block's permutation

    def stack(lst, rows, cols, dtype):
        return jnp.asarray(np.stack([_pad2(a, rows, cols) for a in lst]), dtype)

    # Padded feature lanes get mask = 1 => identity there, zero log-det
    # contribution (robust even to bf16 rounding).
    masks = []
    for m in eff["mask"]:
        mm = np.ones((1, Dp), np.float32)
        mm[0, :D] = m
        masks.append(mm)

    packed = dict(
        mask=jnp.asarray(np.stack(masks)),
        b1=stack(eff["b1"], 1, Hp, jnp.float32),
        b2=stack(eff["b2"], 1, Hp, jnp.float32),
        b3s=stack(eff["b3s"], 1, Dp, jnp.float32),
        b3t=stack(eff["b3t"], 1, Dp, jnp.float32),
        w2=stack(eff["w2"], Hp, Hp, jnp.bfloat16),
    )
    if fuse:
        packed["w1"] = jnp.asarray(np.stack(
            [np.concatenate([_pad2(a, Dp, Hp), _pad2(b, Cp, Hp)], axis=0)
             for a, b in zip(eff["w1x"], eff["w1c"])]), jnp.bfloat16)
        packed["w3"] = jnp.asarray(np.stack(
            [np.concatenate([_pad2(a, Hp, Dp), _pad2(b, Hp, Dp)], axis=1)
             for a, b in zip(eff["w3s"], eff["w3t"])]), jnp.bfloat16)
    else:
        packed["w1x"] = stack(eff["w1x"], Dp, Hp, jnp.bfloat16)
        packed["w1c"] = stack(eff["w1c"], Cp, Hp, jnp.bfloat16)
        packed["w3s"] = stack(eff["w3s"], Hp, Dp, jnp.bfloat16)
        packed["w3t"] = stack(eff["w3t"], Hp, Dp, jnp.bfloat16)

    return ref_layers, packed, jnp.asarray(G)


# ----------------------------------------------------------------------------
# Pure-JAX reference (mirrors the PyTorch module, explicit per-block gathers)
# ----------------------------------------------------------------------------
def _ref_flow(ref_layers, x, cond):
    ld = jnp.zeros((x.shape[0], 1), jnp.float32)
    for layer in ref_layers:
        for mask, p in ((layer["mask"], layer["p1"]),
                        (1.0 - layer["mask"], layer["p2"])):
            x_a = mask * x
            h = x_a @ p["w1x"] + cond @ p["w1c"] + p["b1"]
            h = jnp.where(h >= 0, h, 0.01 * h)
            h = h @ p["w2"] + p["b2"]
            h = jnp.where(h >= 0, h, 0.01 * h)
            scale = jnp.tanh(h @ p["w3s"] + p["b3s"])
            translate = h @ p["w3t"] + p["b3t"]
            x = x_a + (1.0 - mask) * (x * jnp.exp(scale) + translate)
            ld = ld + jnp.sum(scale * (1.0 - mask), axis=-1, keepdims=True)
        x = x[:, layer["perm"]]
    return x, ld


# ----------------------------------------------------------------------------
if __name__ == "__main__":
    B, DIM_FEATURE, DIM_CONDITION, N_LAYERS, DIM_HIDDEN = 8, 16, 8, 3, 32

    key = jax.random.PRNGKey(0)
    kx, kc, kp = jax.random.split(key, 3)
    x = jax.random.normal(kx, (B, DIM_FEATURE), jnp.float32)
    condition = jax.random.normal(kc, (B, DIM_CONDITION), jnp.float32)

    ref_layers, packed, final_perm = build_flow(
        kp, DIM_FEATURE, DIM_CONDITION, N_LAYERS, DIM_HIDDEN)

    y, log_det = flow_forward(x, condition, packed, final_perm)
    y, log_det = jax.block_until_ready((y, log_det))

    y_ref, ld_ref = _ref_flow(ref_layers, x, condition)
    assert y.shape == (B, DIM_FEATURE) and log_det.shape == (B, 1)
    assert jnp.allclose(y, y_ref, atol=1e-3, rtol=1e-3), "output mismatch"
    assert jnp.allclose(log_det, ld_ref, atol=1e-3, rtol=1e-3), "log-det mismatch"

    print("KERNEL_OK")
</pallas_src>

<mosaic_0001>
module attributes {stable_mosaic.version = 11 : i64} {
  func.func @kernel(%arg0: i32, %arg1: i32, %arg2: memref<8x16xf32, #tpu.memory_space<vmem>>, %arg3: memref<8x8xf32, #tpu.memory_space<vmem>>, %arg4: memref<6x1x16xf32, #tpu.memory_space<vmem>>, %arg5: memref<6x1x32xf32, #tpu.memory_space<vmem>>, %arg6: memref<6x1x32xf32, #tpu.memory_space<vmem>>, %arg7: memref<6x1x16xf32, #tpu.memory_space<vmem>>, %arg8: memref<6x1x16xf32, #tpu.memory_space<vmem>>, %arg9: memref<6x16x32xbf16, #tpu.memory_space<vmem>>, %arg10: memref<6x8x32xbf16, #tpu.memory_space<vmem>>, %arg11: memref<6x32x32xbf16, #tpu.memory_space<vmem>>, %arg12: memref<6x32x16xbf16, #tpu.memory_space<vmem>>, %arg13: memref<6x32x16xbf16, #tpu.memory_space<vmem>>, %arg14: memref<8x16xf32, #tpu.memory_space<vmem>>, %arg15: memref<8x1xf32, #tpu.memory_space<vmem>>, %arg16: memref<8x16xf32, #tpu.memory_space<vmem>>) attributes {dimension_semantics = [#tpu.dimension_semantics<parallel>, #tpu.dimension_semantics<arbitrary>], iteration_bounds = array<i64: 1, 6>, scalar_prefetch = 0 : i64, scratch_operands = 1 : i64, tpu.core_type = #tpu.core_type<tc>, window_params = [{transform_indices = @transform_0, window_bounds = array<i64: 8, 16>}, {transform_indices = @transform_1, window_bounds = array<i64: 8, 8>}, {pipeline_mode = #tpu.pipeline_mode<synchronous>, transform_indices = @transform_2, window_bounds = array<i64: 6, 1, 16>}, {pipeline_mode = #tpu.pipeline_mode<synchronous>, transform_indices = @transform_3, window_bounds = array<i64: 6, 1, 32>}, {pipeline_mode = #tpu.pipeline_mode<synchronous>, transform_indices = @transform_4, window_bounds = array<i64: 6, 1, 32>}, {pipeline_mode = #tpu.pipeline_mode<synchronous>, transform_indices = @transform_5, window_bounds = array<i64: 6, 1, 16>}, {pipeline_mode = #tpu.pipeline_mode<synchronous>, transform_indices = @transform_6, window_bounds = array<i64: 6, 1, 16>}, {pipeline_mode = #tpu.pipeline_mode<synchronous>, transform_indices = @transform_7, window_bounds = array<i64: 6, 16, 32>}, {pipeline_mode = #tpu.pipeline_mode<synchronous>, transform_indices = @transform_8, window_bounds = array<i64: 6, 8, 32>}, {pipeline_mode = #tpu.pipeline_mode<synchronous>, transform_indices = @transform_9, window_bounds = array<i64: 6, 32, 32>}, {pipeline_mode = #tpu.pipeline_mode<synchronous>, transform_indices = @transform_10, window_bounds = array<i64: 6, 32, 16>}, {pipeline_mode = #tpu.pipeline_mode<synchronous>, transform_indices = @transform_11, window_bounds = array<i64: 6, 32, 16>}, {transform_indices = @transform_12, window_bounds = array<i64: 8, 16>}, {transform_indices = @transform_13, window_bounds = array<i64: 8, 1>}]} {
    %c0_i32 = arith.constant 0 : i32
    %0 = arith.cmpi eq, %arg1, %c0_i32 : i32
    %1 = arith.extui %0 : i1 to i32
    %c0_i32_0 = arith.constant 0 : i32
    %2 = arith.cmpi ne, %1, %c0_i32_0 : i32
    scf.if %2 {
      %c0_41 = arith.constant 0 : index
      %c0_42 = arith.constant 0 : index
      %84 = vector.load %arg2[%c0_41, %c0_42] : memref<8x16xf32, #tpu.memory_space<vmem>>, vector<8x16xf32>
      %c0_43 = arith.constant 0 : index
      %c0_44 = arith.constant 0 : index
      %85 = vector.load %arg14[%c0_43, %c0_44] : memref<8x16xf32, #tpu.memory_space<vmem>>, vector<8x16xf32>
      tpu.vector_store %arg14[%c0_43, %c0_44], %84 {strides = array<i32>} : memref<8x16xf32, #tpu.memory_space<vmem>>, vector<8x16xf32>,
      %cst_45 = arith.constant 0.000000e+00 : f32
      %86 = vector.broadcast %cst_45 : f32 to vector<8x16xf32>
      %c0_46 = arith.constant 0 : index
      %c0_47 = arith.constant 0 : index
      %87 = vector.load %arg16[%c0_46, %c0_47] : memref<8x16xf32, #tpu.memory_space<vmem>>, vector<8x16xf32>
      tpu.vector_store %arg16[%c0_46, %c0_47], %86 {strides = array<i32>} : memref<8x16xf32, #tpu.memory_space<vmem>>, vector<8x16xf32>,
    } else {
    }
    %c0 = arith.constant 0 : index
    %c0_1 = arith.constant 0 : index
    %3 = vector.load %arg14[%c0, %c0_1] : memref<8x16xf32, #tpu.memory_space<vmem>>, vector<8x16xf32>
    %4 = arith.index_cast %arg1 : i32 to index
    %c0_2 = arith.constant 0 : index
    %c0_3 = arith.constant 0 : index
    %5 = vector.load %arg4[%4, %c0_2, %c0_3] : memref<6x1x16xf32, #tpu.memory_space<vmem>>, vector<1x1x16xf32>
    %6 = vector.shape_cast %5 : vector<1x1x16xf32> to vector<1x16xf32>
    %cst = arith.constant 0.000000e+00 : f32
    %7 = vector.broadcast %cst : f32 to vector<1x16xf32>
    %8 = arith.cmpf ogt, %6, %7 : vector<1x16xf32>
    %9 = arith.index_cast %arg1 : i32 to index
    %c0_4 = arith.constant 0 : index
    %c0_5 = arith.constant 0 : index
    %10 = vector.load %arg5[%9, %c0_4, %c0_5] : memref<6x1x32xf32, #tpu.memory_space<vmem>>, vector<1x1x32xf32>
    %11 = vector.shape_cast %10 : vector<1x1x32xf32> to vector<1x32xf32>
    %12 = arith.index_cast %arg1 : i32 to index
    %c0_6 = arith.constant 0 : index
    %c0_7 = arith.constant 0 : index
    %13 = vector.load %arg6[%12, %c0_6, %c0_7] : memref<6x1x32xf32, #tpu.memory_space<vmem>>, vector<1x1x32xf32>
    %14 = vector.shape_cast %13 : vector<1x1x32xf32> to vector<1x32xf32>
    %15 = arith.index_cast %arg1 : i32 to index
    %c0_8 = arith.constant 0 : index
    %c0_9 = arith.constant 0 : index
    %16 = vector.load %arg7[%15, %c0_8, %c0_9] : memref<6x1x16xf32, #tpu.memory_space<vmem>>, vector<1x1x16xf32>
    %17 = vector.shape_cast %16 : vector<1x1x16xf32> to vector<1x16xf32>
    %18 = arith.index_cast %arg1 : i32 to index
    %c0_10 = arith.constant 0 : index
    %c0_11 = arith.constant 0 : index
    %19 = vector.load %arg8[%18, %c0_10, %c0_11] : memref<6x1x16xf32, #tpu.memory_space<vmem>>, vector<1x1x16xf32>
    %20 = vector.shape_cast %19 : vector<1x1x16xf32> to vector<1x16xf32>
    %21 = arith.index_cast %arg1 : i32 to index
    %c0_12 = arith.constant 0 : index
    %c0_13 = arith.constant 0 : index
    %22 = vector.load %arg9[%21, %c0_12, %c0_13] : memref<6x16x32xbf16, #tpu.memory_space<vmem>>, vector<1x16x32xbf16>
    %23 = vector.shape_cast %22 : vector<1x16x32xbf16> to vector<16x32xbf16>
    %24 = arith.extf %23 : vector<16x32xbf16> to vector<16x32xf32>
    %cst_14 = arith.constant dense<0.000000e+00> : vector<8x32xf32>
    %25 = tpu.matmul %3, %24, %cst_14 {dimension_numbers = #tpu.dot_dimension_numbers<[1], [0], [0], [1], [0, 0, 1, 1], [], []>} : vector<8x16xf32>, vector<16x32xf32>, vector<8x32xf32> -> vector<8x32xf32>
    %c0_15 = arith.constant 0 : index
    %c0_16 = arith.constant 0 : index
    %26 = vector.load %arg3[%c0_15, %c0_16] : memref<8x8xf32, #tpu.memory_space<vmem>>, vector<8x8xf32>
    %27 = arith.index_cast %arg1 : i32 to index
    %c0_17 = arith.constant 0 : index
    %c0_18 = arith.constant 0 : index
    %28 = vector.load %arg10[%27, %c0_17, %c0_18] : memref<6x8x32xbf16, #tpu.memory_space<vmem>>, vector<1x8x32xbf16>
    %29 = vector.shape_cast %28 : vector<1x8x32xbf16> to vector<8x32xbf16>
    %30 = arith.extf %29 : vector<8x32xbf16> to vector<8x32xf32>
    %cst_19 = arith.constant dense<0.000000e+00> : vector<8x32xf32>
    %31 = tpu.matmul %26, %30, %cst_19 {dimension_numbers = #tpu.dot_dimension_numbers<[1], [0], [0], [1], [0, 0, 1, 1], [], []>} : vector<8x8xf32>, vector<8x32xf32>, vector<8x32xf32> -> vector<8x32xf32>
    %32 = arith.addf %25, %31 : vector<8x32xf32>
    %33 = vector.broadcast %11 : vector<1x32xf32> to vector<8x32xf32>
    %34 = arith.addf %32, %33 : vector<8x32xf32>
    %cst_20 = arith.constant 0.000000e+00 : f32
    %35 = vector.broadcast %cst_20 : f32 to vector<8x32xf32>
    %36 = arith.cmpf oge, %34, %35 : vector<8x32xf32>
    %cst_21 = arith.constant 0.00999999977 : f32
    %37 = vector.broadcast %cst_21 : f32 to vector<8x32xf32>
    %38 = arith.mulf %37, %34 : vector<8x32xf32>
    %39 = arith.select %36, %34, %38 : vector<8x32xi1>, vector<8x32xf32>
    %40 = arith.index_cast %arg1 : i32 to index
    %c0_22 = arith.constant 0 : index
    %c0_23 = arith.constant 0 : index
    %41 = vector.load %arg11[%40, %c0_22, %c0_23] : memref<6x32x32xbf16, #tpu.memory_space<vmem>>, vector<1x32x32xbf16>
    %42 = vector.shape_cast %41 : vector<1x32x32xbf16> to vector<32x32xbf16>
    %43 = arith.extf %42 : vector<32x32xbf16> to vector<32x32xf32>
    %cst_24 = arith.constant dense<0.000000e+00> : vector<8x32xf32>
    %44 = tpu.matmul %39, %43, %cst_24 {dimension_numbers = #tpu.dot_dimension_numbers<[1], [0], [0], [1], [0, 0, 1, 1], [], []>} : vector<8x32xf32>, vector<32x32xf32>, vector<8x32xf32> -> vector<8x32xf32>
    %45 = vector.broadcast %14 : vector<1x32xf32> to vector<8x32xf32>
    %46 = arith.addf %44, %45 : vector<8x32xf32>
    %cst_25 = arith.constant 0.000000e+00 : f32
    %47 = vector.broadcast %cst_25 : f32 to vector<8x32xf32>
    %48 = arith.cmpf oge, %46, %47 : vector<8x32xf32>
    %cst_26 = arith.constant 0.00999999977 : f32
    %49 = vector.broadcast %cst_26 : f32 to vector<8x32xf32>
    %50 = arith.mulf %49, %46 : vector<8x32xf32>
    %51 = arith.select %48, %46, %50 : vector<8x32xi1>, vector<8x32xf32>
    %52 = arith.index_cast %arg1 : i32 to index
    %c0_27 = arith.constant 0 : index
    %c0_28 = arith.constant 0 : index
    %53 = vector.load %arg12[%52, %c0_27, %c0_28] : memref<6x32x16xbf16, #tpu.memory_space<vmem>>, vector<1x32x16xbf16>
    %54 = vector.shape_cast %53 : vector<1x32x16xbf16> to vector<32x16xbf16>
    %55 = arith.extf %54 : vector<32x16xbf16> to vector<32x16xf32>
    %cst_29 = arith.constant dense<0.000000e+00> : vector<8x16xf32>
    %56 = tpu.matmul %51, %55, %cst_29 {dimension_numbers = #tpu.dot_dimension_numbers<[1], [0], [0], [1], [0, 0, 1, 1], [], []>} : vector<8x32xf32>, vector<32x16xf32>, vector<8x16xf32> -> vector<8x16xf32>
    %57 = vector.broadcast %17 : vector<1x16xf32> to vector<8x16xf32>
    %58 = arith.addf %56, %57 : vector<8x16xf32>
    %59 = math.tanh %58 : vector<8x16xf32>
    %60 = arith.index_cast %arg1 : i32 to index
    %c0_30 = arith.constant 0 : index
    %c0_31 = arith.constant 0 : index
    %61 = vector.load %arg13[%60, %c0_30, %c0_31] : memref<6x32x16xbf16, #tpu.memory_space<vmem>>, vector<1x32x16xbf16>
    %62 = vector.shape_cast %61 : vector<1x32x16xbf16> to vector<32x16xbf16>
    %63 = arith.extf %62 : vector<32x16xbf16> to vector<32x16xf32>
    %cst_32 = arith.constant dense<0.000000e+00> : vector<8x16xf32>
    %64 = tpu.matmul %51, %63, %cst_32 {dimension_numbers = #tpu.dot_dimension_numbers<[1], [0], [0], [1], [0, 0, 1, 1], [], []>} : vector<8x32xf32>, vector<32x16xf32>, vector<8x16xf32> -> vector<8x16xf32>
    %65 = vector.broadcast %20 : vector<1x16xf32> to vector<8x16xf32>
    %66 = arith.addf %64, %65 : vector<8x16xf32>
    %67 = math.exp %59 : vector<8x16xf32>
    %68 = arith.mulf %3, %67 : vector<8x16xf32>
    %69 = arith.addf %68, %66 : vector<8x16xf32>
    %70 = vector.shape_cast %8 : vector<1x16xi1> to vector<1x16xi1>
    %71 = vector.broadcast %70 : vector<1x16xi1> to vector<8x16xi1>
    %72 = arith.select %71, %3, %69 : vector<8x16xi1>, vector<8x16xf32>
    %c0_33 = arith.constant 0 : index
    %c0_34 = arith.constant 0 : index
    %73 = vector.load %arg14[%c0_33, %c0_34] : memref<8x16xf32, #tpu.memory_space<vmem>>, vector<8x16xf32>
    tpu.vector_store %arg14[%c0_33, %c0_34], %72 {strides = array<i32>} : memref<8x16xf32, #tpu.memory_space<vmem>>, vector<8x16xf32>,
    %c0_35 = arith.constant 0 : index
    %c0_36 = arith.constant 0 : index
    %74 = vector.load %arg16[%c0_35, %c0_36] : memref<8x16xf32, #tpu.memory_space<vmem>>, vector<8x16xf32>
    %cst_37 = arith.constant 0.000000e+00 : f32
    %75 = vector.shape_cast %8 : vector<1x16xi1> to vector<1x16xi1>
    %76 = vector.broadcast %75 : vector<1x16xi1> to vector<8x16xi1>
    %77 = vector.broadcast %cst_37 : f32 to vector<8x16xf32>
    %78 = arith.select %76, %77, %59 : vector<8x16xi1>, vector<8x16xf32>
    %79 = arith.addf %74, %78 : vector<8x16xf32>
    %c0_38 = arith.constant 0 : index
    %c0_39 = arith.constant 0 : index
    %80 = vector.load %arg16[%c0_38, %c0_39] : memref<8x16xf32, #tpu.memory_space<vmem>>, vector<8x16xf32>
    tpu.vector_store %arg16[%c0_38, %c0_39], %79 {strides = array<i32>} : memref<8x16xf32, #tpu.memory_space<vmem>>, vector<8x16xf32>,
    %c5_i32 = arith.constant 5 : i32
    %81 = arith.cmpi eq, %arg1, %c5_i32 : i32
    %82 = arith.extui %81 : i1 to i32
    %c0_i32_40 = arith.constant 0 : i32
    %83 = arith.cmpi ne, %82, %c0_i32_40 : i32
    scf.if %83 {
      %c0_41 = arith.constant 0 : index
      %c0_42 = arith.constant 0 : index
      %84 = vector.load %arg16[%c0_41, %c0_42] : memref<8x16xf32, #tpu.memory_space<vmem>>, vector<8x16xf32>
      %cst_43 = arith.constant dense<0.000000e+00> : vector<8xf32>
      %85 = vector.multi_reduction <add>, %84, %cst_43 [1] : vector<8x16xf32> to vector<8xf32>
      %86 = vector.shape_cast %85 : vector<8xf32> to vector<8x1xf32>
      %c0_44 = arith.constant 0 : index
      %c0_45 = arith.constant 0 : index
      %87 = vector.load %arg15[%c0_44, %c0_45] : memref<8x1xf32, #tpu.memory_space<vmem>>, vector<8x1xf32>
      tpu.vector_store %arg15[%c0_44, %c0_45], %86 {strides = array<i32>} : memref<8x1xf32, #tpu.memory_space<vmem>>, vector<8x1xf32>,
    } else {
    }
    return
  }
  func.func @transform_0(%arg0: i32, %arg1: i32) -> (i32, i32) {
    %c0_i32 = arith.constant 0 : i32
    %c0_i32_0 = arith.constant 0 : i32
    return %arg0, %c0_i32 : i32, i32
  }
  func.func @transform_1(%arg0: i32, %arg1: i32) -> (i32, i32) {
    %c0_i32 = arith.constant 0 : i32
    %c0_i32_0 = arith.constant 0 : i32
    return %arg0, %c0_i32 : i32, i32
  }
  func.func @transform_2(%arg0: i32, %arg1: i32) -> (i32, i32, i32) {
    %c0_i32 = arith.constant 0 : i32
    %c0_i32_0 = arith.constant 0 : i32
    %c0_i32_1 = arith.constant 0 : i32
    %c0_i32_2 = arith.constant 0 : i32
    return %c0_i32, %c0_i32_0, %c0_i32_1 : i32, i32, i32
  }
  func.func @transform_3(%arg0: i32, %arg1: i32) -> (i32, i32, i32) {
    %c0_i32 = arith.constant 0 : i32
    %c0_i32_0 = arith.constant 0 : i32
    %c0_i32_1 = arith.constant 0 : i32
    %c0_i32_2 = arith.constant 0 : i32
    return %c0_i32, %c0_i32_0, %c0_i32_1 : i32, i32, i32
  }
  func.func @transform_4(%arg0: i32, %arg1: i32) -> (i32, i32, i32) {
    %c0_i32 = arith.constant 0 : i32
    %c0_i32_0 = arith.constant 0 : i32
    %c0_i32_1 = arith.constant 0 : i32
    %c0_i32_2 = arith.constant 0 : i32
    return %c0_i32, %c0_i32_0, %c0_i32_1 : i32, i32, i32
  }
  func.func @transform_5(%arg0: i32, %arg1: i32) -> (i32, i32, i32) {
    %c0_i32 = arith.constant 0 : i32
    %c0_i32_0 = arith.constant 0 : i32
    %c0_i32_1 = arith.constant 0 : i32
    %c0_i32_2 = arith.constant 0 : i32
    return %c0_i32, %c0_i32_0, %c0_i32_1 : i32, i32, i32
  }
  func.func @transform_6(%arg0: i32, %arg1: i32) -> (i32, i32, i32) {
    %c0_i32 = arith.constant 0 : i32
    %c0_i32_0 = arith.constant 0 : i32
    %c0_i32_1 = arith.constant 0 : i32
    %c0_i32_2 = arith.constant 0 : i32
    return %c0_i32, %c0_i32_0, %c0_i32_1 : i32, i32, i32
  }
  func.func @transform_7(%arg0: i32, %arg1: i32) -> (i32, i32, i32) {
    %c0_i32 = arith.constant 0 : i32
    %c0_i32_0 = arith.constant 0 : i32
    %c0_i32_1 = arith.constant 0 : i32
    %c0_i32_2 = arith.constant 0 : i32
    return %c0_i32, %c0_i32_0, %c0_i32_1 : i32, i32, i32
  }
  func.func @transform_8(%arg0: i32, %arg1: i32) -> (i32, i32, i32) {
    %c0_i32 = arith.constant 0 : i32
    %c0_i32_0 = arith.constant 0 : i32
    %c0_i32_1 = arith.constant 0 : i32
    %c0_i32_2 = arith.constant 0 : i32
    return %c0_i32, %c0_i32_0, %c0_i32_1 : i32, i32, i32
  }
  func.func @transform_9(%arg0: i32, %arg1: i32) -> (i32, i32, i32) {
    %c0_i32 = arith.constant 0 : i32
    %c0_i32_0 = arith.constant 0 : i32
    %c0_i32_1 = arith.constant 0 : i32
    %c0_i32_2 = arith.constant 0 : i32
    return %c0_i32, %c0_i32_0, %c0_i32_1 : i32, i32, i32
  }
  func.func @transform_10(%arg0: i32, %arg1: i32) -> (i32, i32, i32) {
    %c0_i32 = arith.constant 0 : i32
    %c0_i32_0 = arith.constant 0 : i32
    %c0_i32_1 = arith.constant 0 : i32
    %c0_i32_2 = arith.constant 0 : i32
    return %c0_i32, %c0_i32_0, %c0_i32_1 : i32, i32, i32
  }
  func.func @transform_11(%arg0: i32, %arg1: i32) -> (i32, i32, i32) {
    %c0_i32 = arith.constant 0 : i32
    %c0_i32_0 = arith.constant 0 : i32
    %c0_i32_1 = arith.constant 0 : i32
    %c0_i32_2 = arith.constant 0 : i32
    return %c0_i32, %c0_i32_0, %c0_i32_1 : i32, i32, i32
  }
  func.func @transform_12(%arg0: i32, %arg1: i32) -> (i32, i32) {
    %c0_i32 = arith.constant 0 : i32
    %c0_i32_0 = arith.constant 0 : i32
    return %arg0, %c0_i32 : i32, i32
  }
  func.func @transform_13(%arg0: i32, %arg1: i32) -> (i32, i32) {
    %c0_i32 = arith.constant 0 : i32
    %c0_i32_0 = arith.constant 0 : i32
    return %arg0, %c0_i32 : i32, i32
  }
}

</mosaic_0001>

<bundles_post_ra>
// kernel: tpu_custom_call.1
= control target key start
LH: loop header
LB: loop body
LE: loop exit
PB: predicated region body
PF: predicated region fallthrough
CT: control target
= control target key end

     0   :  { %19 = vsyncpa [#allocation4], 0  ;;  %s1394_s25 = smov 0   ;;  %s1396_s26 = smov 0   ;;  %s1518_s0 = inlined_call_operand.vmem [shape: f32[8,16], index: 0, kind: input, shape index: {}]   ;;  %s1519_s1 = inlined_call_operand.vmem [shape: f32[8,8], index: 1, kind: input, shape index: {}]   ;;  %s1520_s2 = inlined_call_operand.vmem [shape: f32[6,1,16], index: 2, kind: input, shape index: {}]   ;;  %s1521_s3 = inlined_call_operand.vmem [shape: f32[6,1,32], index: 3, kind: input, shape index: {}]   ;;  %s1522_s4 = inlined_call_operand.vmem [shape: f32[6,1,32], index: 4, kind: input, shape index: {}]   ;;  %s1523_s5 = inlined_call_operand.vmem [shape: f32[6,1,16], index: 5, kind: input, shape index: {}]   ;;  %s1524_s6 = inlined_call_operand.vmem [shape: f32[6,1,16], index: 6, kind: input, shape index: {}]   ;;  %s1525_s7 = inlined_call_operand.vmem [shape: bf16[6,16,32], index: 7, kind: input, shape index: {}]   ;;  %s1526_s8 = inlined_call_operand.vmem [shape: bf16[6,8,32], index: 8, kind: input, shape index: {}]   ;;  %s1527_s9 = inlined_call_operand.vmem [shape: bf16[6,32,32], index: 9, kind: input, shape index: {}]   ;;  %s1528_s10 = inlined_call_operand.vmem [shape: bf16[6,32,16], index: 10, kind: input, shape index: {}]   ;;  %s1529_s11 = inlined_call_operand.vmem [shape: bf16[6,32,16], index: 11, kind: input, shape index: {}]   ;;  %s1530_s12 = inlined_call_operand.hbm [shape: f32[8,16], index: 12, kind: output, shape index: {0}]   ;;  %s1531_s13 = inlined_call_operand.vmem [shape: f32[8,1], index: 13, kind: output, shape index: {1}]  }
   0x1   :  { %s1398_s27 = smov 0  }
   0x2 LB: > { %s1075_s28 = sadd.s32 4294967295, %s1316_s27   ;;  %s34_s29 = sadd.s32 1, %s1312_s26  ;;  %s1316_s27 = sphi %s1398_s27, %s25_s27   ;;  %s1312_s26 = sphi %s1396_s26, %s1534_s26   ;;  %s1308_s25 = sphi %s1394_s25, %s1533_s25  }
   0x3   : > { %p35_p0 = scmp.ge.s32.totalorder %s34_s29, 6  ;;  %p1079_p1 = scmp.ge.s32.totalorder %s1316_s27, 1 }
   0x4   : > { %p411_p2 = scmp.lt.s32.totalorder %s1316_s27, 7 }
   0x5   : > { %s1536_s29 = smov (%p35_p0, %s34_s29), 0 }
   0x6   : > { %p412_p3 = pnand %p1079_p1, %p411_p2 }
   0x7   : > { %p1080_p4 = scmp.ne.s32.totalorder (!%p412_p3), %s1308_s25, 0 }
   0x8   : > { %415 = sbr.rel (%p412_p3) target bundleno = 873 (0x369), region = 68 }
   0xf   : > { %472 = sbr.rel (%p1080_p4) target bundleno = 22 (0x16), region = 72  ;;  %v473_v0 = vld [vmem:[%s1518_s0] sm:$0xff] (!%p1080_p4)  ;;  %vm474_vm0 = vcmask (!%p1080_p4), 130048   ;;  %v1318_v1 = vmov (!%p1080_p4), 0.0  }
  0x10   : > { %475 = vst.msk [vmem:[#allocation3] sm:$0xff] (!%p1080_p4), %vm474_vm0, %v473_v0  ;;  %476 = vst.msk [vmem:[#allocation2] sm:$0xff] (!%p1080_p4), %vm474_vm0, %v1318_v1 }
  0x16 PF: > { %s1083_s15 = sshll.u32 %s1308_s25, 2  ;;  %v1319_v2 = vmov 0.0   ;;  %vm1320_vm1 = vmmov 0   ;;  %s1103_s19 = sshll.u32 %s1308_s25, 3  ;;  %v1321_v4 = vmov 0.0|0.0   ;;  %v496_v6 = vld [vmem:[%s1519_s1] sm:$0xff]  ;;  %v934_v30 = vlaneseq }
  0x17   : > { %1158 = vmatprep.subr.mxu1 %v1319_v2  ;;  %s498_s18 = scalar_lea.vmem %s1526_s8, %s1083_s15  ;;  %1160 = vmatprep.mubr.msk.f32.mxu1 %vm1320_vm1, %v1319_v2  ;;  %s491_s22 = scalar_lea.vmem %s1525_s7, %s1103_s19  ;;  %vm501_vm2 = vcmask 64512   ;;  %v1433_v8 = vld [vmem:[#allocation3] sm:$0xff]  ;;  %vm575_vm3 = vcmask 130048   ;;  %vm676_vm5 = vcmask 261120   ;;  %v1322_v40 = vmov 0   ;;  %v941_v43 = vld [vmem:[#allocation2] sm:$0xff] }
  0x18   : > { %v499_v3 = vld [vmem:[%s498_s18] sm:$0xf]  ;;  %1206 = vmatprep.subr.bf16.mxu0 %v1321_v4  ;;  %1178 = vmatprep.mubr.msk.f32.mxu0 %vm1320_vm1, %v1319_v2  ;;  %s1104_s30 = sshll.u32 %s1308_s25, 4  ;;  %v935_v33 = vshrl.u32 %v934_v30, 7  ;;  %p1097_p5 = scmp.ne.s32.totalorder %s1308_s25, 5 }
  0x19   : > { %v500_v5 = vunpack.c.l.bf16 %v499_v3  ;;  %v1108_v7 = vld [vmem:[%s491_s22] sm:$0xff]   ;;  %s661_s16 = scalar_lea.vmem %s1527_s9, %s1104_s30  ;;  %s754_s19 = scalar_lea.vmem %s1528_s10, %s1104_s30  ;;  %vm953_vm9 = vcmask (!%p1097_p5), 7168  }
  0x1a   : > { %v1112_v9 = vld [vmem:[%s661_s16] sm:$0xff]   ;;  %v1135_v10 = vld [vmem:[%s661_s16 + $0x8] sm:$0xff]   ;;  %s481_s22 = scalar_lea.vmem %s1521_s3, %s1308_s25  ;;  %s844_s14 = scalar_lea.vmem %s1529_s11, %s1104_s30  ;;  %v936_v39 = vsub.s32 0, %v935_v33 }
  0x1b   : > { %1159 = vmatpush3.msra.mxu1 %v500_v5  ;;  %1208 = vmatpush3.bf16.msra.mxu0 %v1112_v9  ;;  %v1120_v11 = vld [vmem:[%s754_s19] sm:$0xff]   ;;  %v1136_v22 = vld [vmem:[%s754_s19 + $0x8] sm:$0xff]   ;;  %s483_s30 = scalar_lea.vmem %s1522_s4, %s1308_s25  ;;  %s485_s19 = scalar_lea.vmem %s1523_s5, %s1308_s25 }
  0x1c   : > { %1161 = vmatmul.mubr.msk.f32.vlgmr.msra.gmra.mrb[0].mxu1 %vm501_vm2, %v496_v6  ;;  %1203 = vmatprep.subr.bf16.mxu1 %v1321_v4  ;;  %v1086_v14 = vld [vmem:[%s481_s22] ss:$0 sm:$0xff]  ;;  %v1137_v23 = vld [vmem:[%s844_s14 + $0x8] sm:$0xff]   ;;  %s478_s22 = scalar_lea.vmem %s1520_s2, %s1308_s25 }
  0x1d   : > { %1205 = vmatpush3.bf16.msra.mxu1 %v1108_v7  ;;  %1167 = vmatprep.mubr.msk.f32.mxu1 %vm1320_vm1, %v1319_v2  ;;  %v1128_v20 = vld [vmem:[%s844_s14] sm:$0xff]   ;;  %s487_s14 = scalar_lea.vmem %s1524_s6, %s1308_s25 }
  0x1e   : > { %1212 = vmatprep.subr.bf16.mxu1 %v1321_v4  ;;  %1209 = vmatprep.subr.bf16.mxu0 %v1321_v4  ;;  %v1089_v24 = vld [vmem:[%s483_s30] ss:$0 sm:$0xff] }
  0x1f   : > { %1211 = vmatpush3.bf16.msra.mxu0 %v1135_v10  ;;  %v1092_v31 = vld [vmem:[%s485_s19] ss:$0 sm:$0xff] }
  0x20   : > { %1168 = vmatmul.mubr.msk.f32.vlgmr.msra.gmra.mrb[2].mxu1 %vm575_vm3, %v1433_v8  ;;  %1218 = vmatprep.subr.bf16.mxu0 %v1321_v4  ;;  %v479_v32 = vld [vmem:[%s478_s22] sm:$0x1] }
  0x21   : > { %1189 = vmatprep.mubr.msk.f32.mxu1 %vm1320_vm1, %v1319_v2  ;;  %1214 = vmatpush3.bf16.msra.mxu1 %v1120_v11  ;;  %vm480_vm7 = vcmp.gt.f32.partialorder %v479_v32, 0.0  ;;  %v1095_v48 = vld [vmem:[%s487_s14] ss:$0 sm:$0xff] }
  0x22   : > { %1215 = vmatprep.subr.bf16.mxu1 %v1321_v4  ;;  %v933_v41 = vsel %vm480_vm7, 1, %v1322_v40 }
  0x23   : > { %v937_v42 = vrot.slane %v933_v41, %v936_v39 }
  0x25   : > { %1217 = vmatpush3.bf16.msra.mxu1 %v1136_v22  ;;  %vm938_vm8 = vcmp.eq.s32.totalorder %v937_v42, 1 }
  0xef   : > { %v571_v12 = vpop.f32.mrb[0].mxu1 }
  0xf0   : > { %v1162_v13 = vpop.f32.mrb[1].mxu1 }
  0xf3   : > { %v645_v15 = vpop.f32.mrb[2].mxu1 }
  0xf4   : > { %v646_v16 = vadd.f32 %v645_v15, %v571_v12  ;;  %v1169_v17 = vpop.f32.mrb[3].mxu1 }
  0xf6   : > { %v655_v18 = vadd.f32 %v1086_v14, %v646_v16 }
  0xf8   : > { %v657_v19 = vmul.f32 0.01, %v655_v18  ;;  %vm656_vm4 = vcmp.ge.f32.partialorder %v655_v18, 0.0 }
  0xfa   : > { %v658_v21 = vsel %vm656_vm4, %v655_v18, %v657_v19 }
  0xfb   : > { %1179 = vmatmul.mubr.msk.f32.vlgmr.msra.gmra.mrb[0].mxu0 %vm676_vm5, %v658_v21 }
  0xfc   : > { %1220 = vmatpush3.bf16.msra.mxu0 %v1128_v20  ;;  %1200 = vmatprep.mubr.msk.f32.mxu0 %vm1320_vm1, %v1319_v2 }
  0xfd   : > { %1221 = vmatprep.subr.bf16.mxu0 %v1321_v4 }
 0x100   : > { %1223 = vmatpush3.bf16.msra.mxu0 %v1137_v23 }
 0x1ce   : > { %v746_v25 = vpop.f32.mrb[0].mxu0 }
 0x1cf   : > { %v747_v26 = vadd.f32 %v1089_v24, %v746_v25  ;;  %v1180_v27 = vpop.f32.mrb[1].mxu0 }
 0x1d1   : > { %vm750_vm6 = vcmp.ge.f32.partialorder %v747_v26, 0.0  ;;  %v751_v28 = vmul.f32 0.01, %v747_v26 }
 0x1d3   : > { %v752_v29 = vsel %vm750_vm6, %v747_v26, %v751_v28 }
 0x1d4   : > { %1190 = vmatmul.mubr.msk.f32.vlgmr.msra.gmra.mrb[4].mxu1 %vm676_vm5, %v752_v29  ;;  %1201 = vmatmul.mubr.msk.f32.vlgmr.msra.gmra.mrb[2].mxu0 %vm676_vm5, %v752_v29 }
 0x2a7   : > { %v838_v34 = vpop.f32.mrb[4].mxu1  ;;  %v925_v35 = vpop.f32.mrb[2].mxu0 }
 0x2a8   : > { %v839_v36 = vadd.f32 %v1092_v31, %v838_v34  ;;  %v1191_v37 = vpop.f32.mrb[5].mxu1  ;;  %v1202_v38 = vpop.f32.mrb[3].mxu0  ;;  %v926_v50 = vadd.f32 %v1095_v48, %v925_v35 }
 0x2aa   : > { %1260 = vtanh.f32 %v839_v36 }
 0x2b4   : > { %v1261_v44 = vpop.eup %1260 }
 0x2b5   : > { %v929_v45 = vmul.f32 1.442695, %v1261_v44  ;;  %v942_v46 = vsel %vm938_vm8, 0.0, %v1261_v44 }
 0x2b6   : > { %v943_v47 = vadd.f32 %v942_v46, %v941_v43 }
 0x2b7   : > { %1262 = vpow2.f32 %v929_v45 }
 0x2b8   : > { %944 = vst.msk [vmem:[#allocation2] sm:$0xff] %vm575_vm3, %v943_v47 }
 0x2bf   : > { %v949_v54 = vld [vmem:[#allocation2] sm:$0xff] (!%p1097_p5) }
 0x2c0   : > { %v950_v55 = vsel (!%p1097_p5), %vm575_vm3, %v949_v54, 0.0 }
 0x2c1   : > { %v1263_v49 = vpop.eup %1262  ;;  %948 = sbr.rel (%p1097_p5) target bundleno = 848 (0x350), region = 76  ;;  %951 = vadd.xlane.f32.xlu0 (!%p1097_p5), %v950_v55 }
 0x2c2   : > { %v931_v51 = vmul.f32 %v1263_v49, %v1433_v8 }
 0x2c4   : > { %v932_v52 = vadd.f32 %v931_v51, %v926_v50 }
 0x2c6   : > { %v939_v53 = vsel %vm938_vm8, %v1433_v8, %v932_v52 }
 0x2c7   : > { %940 = vst.msk [vmem:[#allocation3] sm:$0xff] %vm575_vm3, %v939_v53 }
 0x34e   : > { %v952_v56 = vpop.xlane.xlu0 %951 }
 0x34f   : > { %954 = vst.msk [vmem:[%s1531_s13] sm:$0xff] %vm953_vm9, %v952_v56 }
 0x350 PF: > { %p1483_p6 = scmp.eq.s32.totalorder %s1075_s28, 5  ;;  %s1323_s25 = smov [#allocation3]  }
 0x351   : > { %s968_s17 = sshll.u32 %s1323_s25, 4  ;;  %s969_s17 = int_to_ptr.vmem [resolvable:$true] %s968_s17 }
 0x352   : > { %s1264_s18 = scalar_lea.vmem %s969_s17, 128  ;;  %p1271_p10 = scmp.lt.s32.totalorder %s969_s17, %s969_s17 }
 0x353   : > { %p1265_p7 = scmp.ne.s32.totalorder %s969_s17, %s1264_s18  ;;  %p1272_p11 = scmp.lt.s32.totalorder %s1264_s18, %s1264_s18 }
 0x355   : > { %p1266_p8 = pnand %p1265_p7, %p1483_p6  ;;  %p1273_p12 = por %p1272_p11, %p1271_p10 }
 0x357   : > { %p1267_p9 = pneg %p1266_p8 }
 0x359   : > { %p1274_p13 = pnand %p1273_p12, %p1267_p9 }
 0x35b   : > { %1277 = shalt.err (!%p1274_p13)
}
 0x35c   : > { %s1278_s28 = scalar_lea.hbm %s1530_s12, 128 }
 0x35d   : > { %p1279_p0 = scmp.ne.s32.totalorder %s1530_s12, %s1278_s28  ;;  %p1284_p3 = scmp.lt.u32.totalorder %s1278_s28, %s1530_s12 }
 0x35f   : > { %p1280_p1 = pnand %p1279_p0, %p1483_p6 }
 0x361   : > { %p1281_p2 = pneg %p1280_p1 }
 0x363   : > { %p1286_p4 = pnand %p1284_p3, %p1281_p2 }
 0x365   : > { %1289 = shalt.err (!%p1286_p4)
}
 0x366   : > { %1225 = dma.vmem_to_hbm [thread:$0]  (%p1483_p6), %s969_s17, 128, %s1530_s12, [#allocation4]  }
 0x367   : > { %1303 = dma.done.wait (%p1483_p6), [#allocation4], 128  }
 0x368   : > { %1305 = vsyncadd (%p1483_p6), [#allocation4], 4294967168 }
 0x369 PF: > { %s25_s27 = sadd.s32 1, %s1316_s27   ;;  %s1533_s25 = smov %s1312_s26 }
 0x36a   : > { %p22_p5 = scmp.ge.s32.totalorder %s25_s27, 8   ;;  %s1534_s26 = smov %s1536_s29 }
 0x36c   :  { %24 = sbr.rel (!%p22_p5) target bundleno = 2 (0x2), region = 129 }
 0x373   :  { %991 = vsyncpa [#allocation4], 1 }
 0x374   :  { %993 = vsyncpa [#allocation4 + $0x1], 1 }

</bundles_post_ra>
